<compile_context>
chip_gen: v5e
topology: v5e:2x2
jax: 0.10.0
libtpu: 0.0.40
codegen_flags: <defaults>
</compile_context>

<pallas_src>
import functools

import numpy as np
import jax
import jax.numpy as jnp
from jax.experimental import pallas as pl
from jax.experimental.pallas import tpu as pltpu


def _bilinear_matrix(out_size: int, in_size: int) -> np.ndarray:
    """Interpolation matrix matching F.interpolate(mode='bilinear', align_corners=False)."""
    scale = in_size / out_size
    dst = np.arange(out_size, dtype=np.float64)
    src = (dst + 0.5) * scale - 0.5
    src = np.maximum(src, 0.0)  # torch clamps negative source coords to 0
    i0 = np.minimum(np.floor(src).astype(np.int64), in_size - 1)
    i1 = np.minimum(i0 + 1, in_size - 1)
    frac = src - i0
    m = np.zeros((out_size, in_size), dtype=np.float32)
    m[np.arange(out_size), i0] += (1.0 - frac).astype(np.float32)
    m[np.arange(out_size), i1] += frac.astype(np.float32)
    return m


def _pick_tile_h(H: int, W: int, C: int, elem_bytes: int,
                 budget_bytes: int = 2 << 20) -> int:
    """Largest TILE_H dividing H whose pred_class block fits the VMEM budget.

    TILE_H must either equal H (full-dim block) or satisfy TILE_H % 8 == 0 and
    (TILE_H * W) % 128 == 0 so all blocks stay (8,128)-aligned and lane-dense.
    """
    candidates = [th for th in range(H, 0, -1)
                  if H % th == 0
                  and (th == H or (th % 8 == 0 and (th * W) % 128 == 0))]
    for th in candidates:
        if C * th * W * elem_bytes <= budget_bytes:
            return th
    return candidates[-1]


def _hybrid_loss_kernel(pred_class_ref, pred_density_ref, target_ref,
                        rh_ref, rw_ref, out_ref, acc_ref, tflat_ref,
                        *, bins, tile_h, w):
    h = pl.program_id(1)

    @pl.when(h == 0)
    def _init():
        acc_ref[0] = 0.0
        acc_ref[1] = 0.0

    # --- bilinear resize of the target rows belonging to this H tile ----------
    # (TILE_H, Ht) @ (Ht, Wt) @ (Wt, W): bf16 operands on the MXU, f32 accumulate.
    rh_t = rh_ref[...].astype(jnp.bfloat16)
    rw_t = rw_ref[...].astype(jnp.bfloat16)
    t_in = target_ref[...].astype(jnp.bfloat16)
    t_rows = jnp.dot(rh_t, t_in, preferred_element_type=jnp.float32)        # (TILE_H, Wt)
    t_rs = jnp.dot(t_rows.astype(jnp.bfloat16), rw_t,
                   preferred_element_type=jnp.float32)                      # (TILE_H, W)

    # Flatten (TILE_H, W) -> (1, TILE_H*W) row-major through a small VMEM
    # scratch (static lane-offset stores), so the heavy CE/MSE work below is
    # lane-dense regardless of W.
    for i in range(tile_h):
        tflat_ref[0:1, i * w:(i + 1) * w] = t_rs[i:i + 1, :]
    t_flat = tflat_ref[...]                                                 # (1, TILE_H*W)

    # --- per-pixel cross entropy over the class (bin) axis, lane-dense --------
    logits = pred_class_ref[...].astype(jnp.float32)                        # (C, TILE_H*W)
    m = jnp.max(logits, axis=0, keepdims=True)
    lse = m + jnp.log(jnp.sum(jnp.exp(logits - m), axis=0, keepdims=True))  # (1, TILE_H*W)

    # Target-logit selection folded into the bin loop: later bins overwrite
    # earlier ones; pixels outside every bin keep class 0 (same semantics as
    # _bin_count followed by a gather).
    tgt_logit = logits[0:1, :]
    for i, (lo, hi) in enumerate(bins):
        if i == 0:
            continue  # class-0 default already equals logits[0]
        mask = (t_flat >= lo) & (t_flat <= hi)
        tgt_logit = jnp.where(mask, logits[i:i + 1, :], tgt_logit)
    ce_sum = jnp.sum(lse - tgt_logit)

    # --- MSE between predicted and resized target density ---------------------
    diff = pred_density_ref[...].astype(jnp.float32) - t_flat
    mse_sum = jnp.sum(diff * diff)

    acc_ref[0] += ce_sum
    acc_ref[1] += mse_sum

    @pl.when(h == pl.num_programs(1) - 1)
    def _finalize():
        out_ref[0:1, :] = jnp.broadcast_to(acc_ref[0], (1, 128))
        out_ref[1:2, :] = jnp.broadcast_to(acc_ref[1], (1, 128))


def adaptive_hybrid_loss(pred_class, pred_density, target_density, *,
                         bins, weight_count_loss=1.0, tile_h=None,
                         debug_stats=False):
    """Returns (loss, loss_info) with the same semantics as AdaptiveHybridLoss.forward."""
    if target_density.ndim == 4:                     # (B, 1, Ht, Wt) -> (B, Ht, Wt)
        assert target_density.shape[1] == 1, 'expected a singleton channel axis'
        target_density = jnp.squeeze(target_density, axis=1)
    B, C, H, W = pred_class.shape
    Bt, Ht, Wt = target_density.shape
    assert Bt == pred_density.shape[0], 'Batch size mismatch between target and prediction'
    assert pred_density.shape[-2:] == (H, W), 'pred_class / pred_density spatial mismatch'
    assert len(bins) <= C, 'more bins than prediction classes'

    if tile_h is None:
        tile_h = _pick_tile_h(H, W, C, pred_class.dtype.itemsize)
    assert H % tile_h == 0 and (tile_h == H or (tile_h * W) % 128 == 0)
    n_h = H // tile_h
    thw = tile_h * W

    # Lane-dense views (row-major reshapes of contiguous trailing dims -> free).
    pred_class_f = pred_class.reshape(B, C, H * W)
    pred_density_f = pred_density.reshape(B, 1, H * W)

    # Bilinear interpolation operators (f32 in HBM; cast to bf16 inside kernel).
    rh = jnp.asarray(_bilinear_matrix(H, Ht))                                # (H, Ht)
    rw = jnp.asarray(np.ascontiguousarray(_bilinear_matrix(W, Wt).T))        # (Wt, W)

    kernel = functools.partial(_hybrid_loss_kernel, bins=tuple(bins),
                               tile_h=tile_h, w=W)

    partials = pl.pallas_call(
        kernel,
        out_shape=jax.ShapeDtypeStruct((B, 2, 128), jnp.float32),
        grid=(B, n_h),
        in_specs=[
            pl.BlockSpec((None, C, thw), lambda b, h: (b, 0, h)),    # pred_class (lane-dense)
            pl.BlockSpec((None, 1, thw), lambda b, h: (b, 0, h)),    # pred_density (lane-dense)
            pl.BlockSpec((None, Ht, Wt), lambda b, h: (b, 0, 0)),    # target (VMEM-resident over h)
            pl.BlockSpec((tile_h, Ht), lambda b, h: (h, 0)),         # rh rows for this H tile
            pl.BlockSpec((Wt, W), lambda b, h: (0, 0)),              # rw (resident)
        ],
        out_specs=pl.BlockSpec((None, 2, 128), lambda b, h: (b, 0, 0)),
        scratch_shapes=[pltpu.SMEM((2,), jnp.float32),               # per-batch ce/mse partials
                        pltpu.VMEM((1, thw), jnp.float32)],          # flattened target tile
        compiler_params=pltpu.CompilerParams(
            dimension_semantics=("parallel", "arbitrary")),
    )(pred_class_f, pred_density_f, target_density, rh, rw)

    # Tiny cross-batch reduction + normalisation in plain JAX (f32).
    inv_n = 1.0 / float(B * H * W)
    class_loss = jnp.sum(partials[:, 0, 0]) * inv_n
    mse_loss = jnp.sum(partials[:, 1, 0]) * inv_n
    loss = class_loss + weight_count_loss * mse_loss

    if debug_stats:
        # Matches the reference module's prints. Off by default: these launch
        # full-array reductions over the inputs and force a device->host sync.
        print('CrossEntropyLoss input stats: min:', float(jnp.min(pred_class)),
              'max:', float(jnp.max(pred_class)))
        print('MSELoss input stats: min:', float(jnp.min(pred_density)),
              'max:', float(jnp.max(pred_density)))

    loss_info = {'loss': loss, 'class_loss': class_loss, 'mse_loss': mse_loss}
    return loss, loss_info


if __name__ == "__main__":
    key = jax.random.PRNGKey(0)
    k1, k2, k3 = jax.random.split(key, 3)

    B, C, H, W = 2, 4, 16, 16          # pred_class: per-pixel logits over len(bins) classes
    Ht, Wt = 32, 32                    # ground-truth density map at higher resolution
    bins = [(0.0, 0.1), (0.1, 0.5), (0.5, 1.0), (1.0, 10.0)]

    pred_class = jax.random.normal(k1, (B, C, H, W), dtype=jnp.float32)
    pred_density = jax.nn.relu(jax.random.normal(k2, (B, H, W), dtype=jnp.float32))
    target_density = jax.nn.relu(jax.random.normal(k3, (B, Ht, Wt), dtype=jnp.float32))

    # tile_h=8 -> two H tiles per batch element (exercises the accumulate /
    # finalize path); lane width per tile = 8 * 16 = 128 (fully dense vregs).
    loss, info = adaptive_hybrid_loss(pred_class, pred_density, target_density,
                                      bins=bins, weight_count_loss=1.0, tile_h=8)
    jax.block_until_ready(loss)
    print("KERNEL_OK")
</pallas_src>

<mosaic_0001>
module attributes {stable_mosaic.version = 11 : i64} {
  func.func @_hybrid_loss_kernel(%arg0: i32, %arg1: i32, %arg2: memref<1x4x128xf32, #tpu.memory_space<vmem>>, %arg3: memref<1x1x128xf32, #tpu.memory_space<vmem>>, %arg4: memref<1x32x32xf32, #tpu.memory_space<vmem>>, %arg5: memref<8x32xf32, #tpu.memory_space<vmem>>, %arg6: memref<32x16xf32, #tpu.memory_space<vmem>>, %arg7: memref<1x2x128xf32, #tpu.memory_space<vmem>>, %arg8: memref<2xf32, #tpu.memory_space<smem>>, %arg9: memref<1x128xf32, #tpu.memory_space<vmem>>) attributes {dimension_semantics = [#tpu.dimension_semantics<parallel>, #tpu.dimension_semantics<arbitrary>], iteration_bounds = array<i64: 2, 2>, scalar_prefetch = 0 : i64, scratch_operands = 2 : i64, tpu.core_type = #tpu.core_type<tc>, window_params = [{transform_indices = @transform_0, window_bounds = array<i64: 1, 4, 128>}, {transform_indices = @transform_1, window_bounds = array<i64: 1, 1, 128>}, {transform_indices = @transform_2, window_bounds = array<i64: 1, 32, 32>}, {transform_indices = @transform_3, window_bounds = array<i64: 8, 32>}, {pipeline_mode = #tpu.pipeline_mode<synchronous>, transform_indices = @transform_4, window_bounds = array<i64: 32, 16>}, {transform_indices = @transform_5, window_bounds = array<i64: 1, 2, 128>}]} {
    %c0_i32 = arith.constant 0 : i32
    %0 = arith.cmpi eq, %arg1, %c0_i32 : i32
    %1 = arith.extui %0 : i1 to i32
    %c0_i32_0 = arith.constant 0 : i32
    %2 = arith.cmpi ne, %1, %c0_i32_0 : i32
    scf.if %2 {
      %cst_39 = arith.constant 0.000000e+00 : f32
      %c0_40 = arith.constant 0 : index
      %85 = memref.load %arg8[%c0_40] : memref<2xf32, #tpu.memory_space<smem>>
      memref.store %cst_39, %arg8[%c0_40] : memref<2xf32, #tpu.memory_space<smem>>
      %cst_41 = arith.constant 0.000000e+00 : f32
      %c1_42 = arith.constant 1 : index
      %86 = memref.load %arg8[%c1_42] : memref<2xf32, #tpu.memory_space<smem>>
      memref.store %cst_41, %arg8[%c1_42] : memref<2xf32, #tpu.memory_space<smem>>
    } else {
    }
    %c0 = arith.constant 0 : index
    %c0_1 = arith.constant 0 : index
    %3 = vector.load %arg5[%c0, %c0_1] : memref<8x32xf32, #tpu.memory_space<vmem>>, vector<8x32xf32>
    %4 = arith.truncf %3 : vector<8x32xf32> to vector<8x32xbf16>
    %c0_2 = arith.constant 0 : index
    %c0_3 = arith.constant 0 : index
    %5 = vector.load %arg6[%c0_2, %c0_3] : memref<32x16xf32, #tpu.memory_space<vmem>>, vector<32x16xf32>
    %6 = arith.truncf %5 : vector<32x16xf32> to vector<32x16xbf16>
    %c0_4 = arith.constant 0 : index
    %c0_5 = arith.constant 0 : index
    %c0_6 = arith.constant 0 : index
    %7 = vector.load %arg4[%c0_4, %c0_5, %c0_6] : memref<1x32x32xf32, #tpu.memory_space<vmem>>, vector<1x32x32xf32>
    %8 = vector.shape_cast %7 : vector<1x32x32xf32> to vector<32x32xf32>
    %9 = arith.truncf %8 : vector<32x32xf32> to vector<32x32xbf16>
    %cst = arith.constant dense<0.000000e+00> : vector<8x32xf32>
    %10 = tpu.matmul %4, %9, %cst {dimension_numbers = #tpu.dot_dimension_numbers<[1], [0], [0], [1], [0, 0, 1, 1], [], []>} : vector<8x32xbf16>, vector<32x32xbf16>, vector<8x32xf32> -> vector<8x32xf32>
    %11 = arith.truncf %10 : vector<8x32xf32> to vector<8x32xbf16>
    %cst_7 = arith.constant dense<0.000000e+00> : vector<8x16xf32>
    %12 = tpu.matmul %11, %6, %cst_7 {dimension_numbers = #tpu.dot_dimension_numbers<[1], [0], [0], [1], [0, 0, 1, 1], [], []>} : vector<8x32xbf16>, vector<32x16xbf16>, vector<8x16xf32> -> vector<8x16xf32>
    %13 = vector.extract_strided_slice %12 {offsets = [0, 0], sizes = [1, 16], strides = [1, 1]} : vector<8x16xf32> to vector<1x16xf32>
    %c0_8 = arith.constant 0 : index
    %c0_9 = arith.constant 0 : index
    %14 = vector.load %arg9[%c0_8, %c0_9] : memref<1x128xf32, #tpu.memory_space<vmem>>, vector<1x16xf32>
    tpu.vector_store %arg9[%c0_8, %c0_9], %13 {strides = array<i32>} : memref<1x128xf32, #tpu.memory_space<vmem>>, vector<1x16xf32>,
    %15 = vector.extract_strided_slice %12 {offsets = [1, 0], sizes = [1, 16], strides = [1, 1]} : vector<8x16xf32> to vector<1x16xf32>
    %c0_10 = arith.constant 0 : index
    %c16 = arith.constant 16 : index
    %16 = vector.load %arg9[%c0_10, %c16] : memref<1x128xf32, #tpu.memory_space<vmem>>, vector<1x16xf32>
    tpu.vector_store %arg9[%c0_10, %c16], %15 {strides = array<i32>} : memref<1x128xf32, #tpu.memory_space<vmem>>, vector<1x16xf32>,
    %17 = vector.extract_strided_slice %12 {offsets = [2, 0], sizes = [1, 16], strides = [1, 1]} : vector<8x16xf32> to vector<1x16xf32>
    %c0_11 = arith.constant 0 : index
    %c32 = arith.constant 32 : index
    %18 = vector.load %arg9[%c0_11, %c32] : memref<1x128xf32, #tpu.memory_space<vmem>>, vector<1x16xf32>
    tpu.vector_store %arg9[%c0_11, %c32], %17 {strides = array<i32>} : memref<1x128xf32, #tpu.memory_space<vmem>>, vector<1x16xf32>,
    %19 = vector.extract_strided_slice %12 {offsets = [3, 0], sizes = [1, 16], strides = [1, 1]} : vector<8x16xf32> to vector<1x16xf32>
    %c0_12 = arith.constant 0 : index
    %c48 = arith.constant 48 : index
    %20 = vector.load %arg9[%c0_12, %c48] : memref<1x128xf32, #tpu.memory_space<vmem>>, vector<1x16xf32>
    tpu.vector_store %arg9[%c0_12, %c48], %19 {strides = array<i32>} : memref<1x128xf32, #tpu.memory_space<vmem>>, vector<1x16xf32>,
    %21 = vector.extract_strided_slice %12 {offsets = [4, 0], sizes = [1, 16], strides = [1, 1]} : vector<8x16xf32> to vector<1x16xf32>
    %c0_13 = arith.constant 0 : index
    %c64 = arith.constant 64 : index
    %22 = vector.load %arg9[%c0_13, %c64] : memref<1x128xf32, #tpu.memory_space<vmem>>, vector<1x16xf32>
    tpu.vector_store %arg9[%c0_13, %c64], %21 {strides = array<i32>} : memref<1x128xf32, #tpu.memory_space<vmem>>, vector<1x16xf32>,
    %23 = vector.extract_strided_slice %12 {offsets = [5, 0], sizes = [1, 16], strides = [1, 1]} : vector<8x16xf32> to vector<1x16xf32>
    %c0_14 = arith.constant 0 : index
    %c80 = arith.constant 80 : index
    %24 = vector.load %arg9[%c0_14, %c80] : memref<1x128xf32, #tpu.memory_space<vmem>>, vector<1x16xf32>
    tpu.vector_store %arg9[%c0_14, %c80], %23 {strides = array<i32>} : memref<1x128xf32, #tpu.memory_space<vmem>>, vector<1x16xf32>,
    %25 = vector.extract_strided_slice %12 {offsets = [6, 0], sizes = [1, 16], strides = [1, 1]} : vector<8x16xf32> to vector<1x16xf32>
    %c0_15 = arith.constant 0 : index
    %c96 = arith.constant 96 : index
    %26 = vector.load %arg9[%c0_15, %c96] : memref<1x128xf32, #tpu.memory_space<vmem>>, vector<1x16xf32>
    tpu.vector_store %arg9[%c0_15, %c96], %25 {strides = array<i32>} : memref<1x128xf32, #tpu.memory_space<vmem>>, vector<1x16xf32>,
    %27 = vector.extract_strided_slice %12 {offsets = [7, 0], sizes = [1, 16], strides = [1, 1]} : vector<8x16xf32> to vector<1x16xf32>
    %c0_16 = arith.constant 0 : index
    %c112 = arith.constant 112 : index
    %28 = vector.load %arg9[%c0_16, %c112] : memref<1x128xf32, #tpu.memory_space<vmem>>, vector<1x16xf32>
    tpu.vector_store %arg9[%c0_16, %c112], %27 {strides = array<i32>} : memref<1x128xf32, #tpu.memory_space<vmem>>, vector<1x16xf32>,
    %c0_17 = arith.constant 0 : index
    %c0_18 = arith.constant 0 : index
    %29 = vector.load %arg9[%c0_17, %c0_18] : memref<1x128xf32, #tpu.memory_space<vmem>>, vector<1x128xf32>
    %c0_19 = arith.constant 0 : index
    %c0_20 = arith.constant 0 : index
    %c0_21 = arith.constant 0 : index
    %30 = vector.load %arg2[%c0_19, %c0_20, %c0_21] : memref<1x4x128xf32, #tpu.memory_space<vmem>>, vector<1x4x128xf32>
    %31 = vector.shape_cast %30 : vector<1x4x128xf32> to vector<4x128xf32>
    %cst_22 = arith.constant dense<0xFF800000> : vector<128xf32>
    %32 = vector.multi_reduction <maximumf>, %31, %cst_22 [0] : vector<4x128xf32> to vector<128xf32>
    %33 = vector.shape_cast %32 : vector<128xf32> to vector<1x128xf32>
    %34 = vector.broadcast %33 : vector<1x128xf32> to vector<4x128xf32>
    %35 = arith.subf %31, %34 : vector<4x128xf32>
    %36 = math.exp %35 : vector<4x128xf32>
    %cst_23 = arith.constant dense<0.000000e+00> : vector<128xf32>
    %37 = vector.multi_reduction <add>, %36, %cst_23 [0] : vector<4x128xf32> to vector<128xf32>
    %38 = vector.shape_cast %37 : vector<128xf32> to vector<1x128xf32>
    %39 = math.log %38 : vector<1x128xf32>
    %40 = arith.addf %33, %39 : vector<1x128xf32>
    %41 = vector.extract_strided_slice %31 {offsets = [0, 0], sizes = [1, 128], strides = [1, 1]} : vector<4x128xf32> to vector<1x128xf32>
    %cst_24 = arith.constant 1.000000e-01 : f32
    %42 = vector.broadcast %cst_24 : f32 to vector<1x128xf32>
    %43 = arith.cmpf oge, %29, %42 : vector<1x128xf32>
    %cst_25 = arith.constant 5.000000e-01 : f32
    %44 = vector.broadcast %cst_25 : f32 to vector<1x128xf32>
    %45 = arith.cmpf ole, %29, %44 : vector<1x128xf32>
    %46 = arith.andi %43, %45 : vector<1x128xi1>
    %47 = vector.extract_strided_slice %31 {offsets = [1, 0], sizes = [1, 128], strides = [1, 1]} : vector<4x128xf32> to vector<1x128xf32>
    %48 = arith.select %46, %47, %41 : vector<1x128xi1>, vector<1x128xf32>
    %cst_26 = arith.constant 5.000000e-01 : f32
    %49 = vector.broadcast %cst_26 : f32 to vector<1x128xf32>
    %50 = arith.cmpf oge, %29, %49 : vector<1x128xf32>
    %cst_27 = arith.constant 1.000000e+00 : f32
    %51 = vector.broadcast %cst_27 : f32 to vector<1x128xf32>
    %52 = arith.cmpf ole, %29, %51 : vector<1x128xf32>
    %53 = arith.andi %50, %52 : vector<1x128xi1>
    %54 = vector.extract_strided_slice %31 {offsets = [2, 0], sizes = [1, 128], strides = [1, 1]} : vector<4x128xf32> to vector<1x128xf32>
    %55 = arith.select %53, %54, %48 : vector<1x128xi1>, vector<1x128xf32>
    %cst_28 = arith.constant 1.000000e+00 : f32
    %56 = vector.broadcast %cst_28 : f32 to vector<1x128xf32>
    %57 = arith.cmpf oge, %29, %56 : vector<1x128xf32>
    %cst_29 = arith.constant 1.000000e+01 : f32
    %58 = vector.broadcast %cst_29 : f32 to vector<1x128xf32>
    %59 = arith.cmpf ole, %29, %58 : vector<1x128xf32>
    %60 = arith.andi %57, %59 : vector<1x128xi1>
    %61 = vector.extract_strided_slice %31 {offsets = [3, 0], sizes = [1, 128], strides = [1, 1]} : vector<4x128xf32> to vector<1x128xf32>
    %62 = arith.select %60, %61, %55 : vector<1x128xi1>, vector<1x128xf32>
    %63 = arith.subf %40, %62 : vector<1x128xf32>
    %64 = vector.shape_cast %63 : vector<1x128xf32> to vector<1x1x128xf32>
    %cst_30 = arith.constant dense<0.000000e+00> : vector<1xf32>
    %65 = vector.multi_reduction <add>, %64, %cst_30 [1, 2] : vector<1x1x128xf32> to vector<1xf32>
    %66 = vector.shape_cast %65 : vector<1xf32> to vector<1x1x1xf32>
    %67 = vector.extract %66[0, 0, 0] : f32 from vector<1x1x1xf32>
    %c0_31 = arith.constant 0 : index
    %c0_32 = arith.constant 0 : index
    %c0_33 = arith.constant 0 : index
    %68 = vector.load %arg3[%c0_31, %c0_32, %c0_33] : memref<1x1x128xf32, #tpu.memory_space<vmem>>, vector<1x1x128xf32>
    %69 = vector.shape_cast %68 : vector<1x1x128xf32> to vector<1x128xf32>
    %70 = arith.subf %69, %29 : vector<1x128xf32>
    %71 = arith.mulf %70, %70 : vector<1x128xf32>
    %72 = vector.shape_cast %71 : vector<1x128xf32> to vector<1x1x128xf32>
    %cst_34 = arith.constant dense<0.000000e+00> : vector<1xf32>
    %73 = vector.multi_reduction <add>, %72, %cst_34 [1, 2] : vector<1x1x128xf32> to vector<1xf32>
    %74 = vector.shape_cast %73 : vector<1xf32> to vector<1x1x1xf32>
    %75 = vector.extract %74[0, 0, 0] : f32 from vector<1x1x1xf32>
    %c0_35 = arith.constant 0 : index
    %76 = memref.load %arg8[%c0_35] : memref<2xf32, #tpu.memory_space<smem>>
    %77 = arith.addf %76, %67 : f32
    %c0_36 = arith.constant 0 : index
    %78 = memref.load %arg8[%c0_36] : memref<2xf32, #tpu.memory_space<smem>>
    memref.store %77, %arg8[%c0_36] : memref<2xf32, #tpu.memory_space<smem>>
    %c1 = arith.constant 1 : index
    %79 = memref.load %arg8[%c1] : memref<2xf32, #tpu.memory_space<smem>>
    %80 = arith.addf %79, %75 : f32
    %c1_37 = arith.constant 1 : index
    %81 = memref.load %arg8[%c1_37] : memref<2xf32, #tpu.memory_space<smem>>
    memref.store %80, %arg8[%c1_37] : memref<2xf32, #tpu.memory_space<smem>>
    %c1_i32 = arith.constant 1 : i32
    %82 = arith.cmpi eq, %arg1, %c1_i32 : i32
    %83 = arith.extui %82 : i1 to i32
    %c0_i32_38 = arith.constant 0 : i32
    %84 = arith.cmpi ne, %83, %c0_i32_38 : i32
    scf.if %84 {
      %c0_39 = arith.constant 0 : index
      %85 = memref.load %arg8[%c0_39] : memref<2xf32, #tpu.memory_space<smem>>
      %86 = vector.broadcast %85 : f32 to vector<1x128xf32>
      %c0_40 = arith.constant 0 : index
      %c0_41 = arith.constant 0 : index
      %c0_42 = arith.constant 0 : index
      %87 = vector.load %arg7[%c0_40, %c0_41, %c0_42] : memref<1x2x128xf32, #tpu.memory_space<vmem>>, vector<1x1x128xf32>
      %88 = vector.shape_cast %87 : vector<1x1x128xf32> to vector<1x128xf32>
      %89 = vector.shape_cast %86 : vector<1x128xf32> to vector<1x1x128xf32>
      tpu.vector_store %arg7[%c0_40, %c0_41, %c0_42], %89 {strides = array<i32>} : memref<1x2x128xf32, #tpu.memory_space<vmem>>, vector<1x1x128xf32>,
      %c1_43 = arith.constant 1 : index
      %90 = memref.load %arg8[%c1_43] : memref<2xf32, #tpu.memory_space<smem>>
      %91 = vector.broadcast %90 : f32 to vector<1x128xf32>
      %c0_44 = arith.constant 0 : index
      %c1_45 = arith.constant 1 : index
      %c0_46 = arith.constant 0 : index
      %92 = vector.load %arg7[%c0_44, %c1_45, %c0_46] : memref<1x2x128xf32, #tpu.memory_space<vmem>>, vector<1x1x128xf32>
      %93 = vector.shape_cast %92 : vector<1x1x128xf32> to vector<1x128xf32>
      %94 = vector.shape_cast %91 : vector<1x128xf32> to vector<1x1x128xf32>
      tpu.vector_store %arg7[%c0_44, %c1_45, %c0_46], %94 {strides = array<i32>} : memref<1x2x128xf32, #tpu.memory_space<vmem>>, vector<1x1x128xf32>,
    } else {
    }
    return
  }
  func.func @transform_0(%arg0: i32, %arg1: i32) -> (i32, i32, i32) {
    %c0_i32 = arith.constant 0 : i32
    %c0_i32_0 = arith.constant 0 : i32
    return %arg0, %c0_i32, %arg1 : i32, i32, i32
  }
  func.func @transform_1(%arg0: i32, %arg1: i32) -> (i32, i32, i32) {
    %c0_i32 = arith.constant 0 : i32
    %c0_i32_0 = arith.constant 0 : i32
    return %arg0, %c0_i32, %arg1 : i32, i32, i32
  }
  func.func @transform_2(%arg0: i32, %arg1: i32) -> (i32, i32, i32) {
    %c0_i32 = arith.constant 0 : i32
    %c0_i32_0 = arith.constant 0 : i32
    %c0_i32_1 = arith.constant 0 : i32
    return %arg0, %c0_i32, %c0_i32_0 : i32, i32, i32
  }
  func.func @transform_3(%arg0: i32, %arg1: i32) -> (i32, i32) {
    %c0_i32 = arith.constant 0 : i32
    %c0_i32_0 = arith.constant 0 : i32
    return %arg1, %c0_i32 : i32, i32
  }
  func.func @transform_4(%arg0: i32, %arg1: i32) -> (i32, i32) {
    %c0_i32 = arith.constant 0 : i32
    %c0_i32_0 = arith.constant 0 : i32
    %c0_i32_1 = arith.constant 0 : i32
    return %c0_i32, %c0_i32_0 : i32, i32
  }
  func.func @transform_5(%arg0: i32, %arg1: i32) -> (i32, i32, i32) {
    %c0_i32 = arith.constant 0 : i32
    %c0_i32_0 = arith.constant 0 : i32
    %c0_i32_1 = arith.constant 0 : i32
    return %arg0, %c0_i32, %c0_i32_0 : i32, i32, i32
  }
}

</mosaic_0001>

<bundles_post_ra>
// kernel: tpu_custom_call.1
= control target key start
LH: loop header
LB: loop body
LE: loop exit
PB: predicated region body
PF: predicated region fallthrough
CT: control target
= control target key end

     0   :  { %10 = vsyncpa [#allocation5], 0  ;;  %s1142_s0 = inlined_call_operand.vmem [shape: f32[2,4,256], index: 0, kind: input, shape index: {}]   ;;  %s1143_s1 = inlined_call_operand.vmem [shape: f32[2,1,256], index: 1, kind: input, shape index: {}]   ;;  %s1144_s2 = inlined_call_operand.hbm [shape: f32[2,32,32], index: 2, kind: input, shape index: {}]   ;;  %s1145_s3 = inlined_call_operand.vmem [shape: f32[16,32], index: 3, kind: input, shape index: {}]   ;;  %s1146_s4 = inlined_call_operand.vmem [shape: f32[32,16], index: 4, kind: input, shape index: {}]   ;;  %s1147_s5 = inlined_call_operand.hbm [shape: f32[2,2,128], index: 5, kind: output, shape index: {}]  }
   0x1   :  { %12 = vsyncpa [#allocation5 + $0x1], 0 }
   0x2   :  { %13 = vsyncpa [#allocation6], 0 }
   0x3   :  { %15 = vsyncpa [#allocation6 + $0x1], 0  ;;  %s956_s18 = smov 0   ;;  %s958_s19 = smov 0  }
   0x4   :  { %s960_s20 = smov 0   ;;  %s962_s21 = smov 0  }
   0x5   :  { %s964_s22 = smov 0   ;;  %s966_s23 = smov 0  }
   0x6   :  { %s968_s24 = smov 0   ;;  %s970_s25 = smov 0  }
   0x7 LB: > { %1150 = sst [smem:[#allocation10_spill]] %s906_s23  ;;  %s661_s26 = sadd.s32 4294967295, %s914_s25   ;;  %s914_s25 = sphi %s970_s25, %s21_s25   ;;  %s910_s24 = sphi %s968_s24, %s1164_s24   ;;  %s906_s23 = sphi %s966_s23, %s1158_s23   ;;  %s902_s22 = sphi %s964_s22, %s1163_s22   ;;  %s898_s21 = sphi %s962_s21, %s1157_s21   ;;  %s894_s20 = sphi %s960_s20, %s1162_s20   ;;  %s890_s19 = sphi %s958_s19, %s1161_s19   ;;  %s886_s18 = sphi %s956_s18, %s1160_s18  }
   0x8   : > { %s662_s27 = sadd.s32 4294967294, %s914_s25   ;;  %s30_s28 = sadd.s32 1, %s906_s23 }
   0x9   : > { %s33_s29 = sadd.s32 1, %s910_s24  ;;  %p31_p0 = scmp.ge.s32.totalorder %s30_s28, 2 }
   0xa   : > { %s96_s30 = sadd.s32 1, %s894_s20  ;;  %p103_p1 = scmp.ne.s32.totalorder %s894_s20, %s890_s19 }
   0xb   : > { %p104_p2 = scmp.eq.s32.totalorder %s914_s25, 0  ;;  %s1166_s28 = smov (%p31_p0, %s30_s28), 0 }
   0xc   : > { %1151 = sst [smem:[#allocation11_spill]] %s1166_s28  ;;  %s1168_s29 = smov (!%p31_p0, %s33_s29), %s910_s24 }
   0xd   : > { %p1007_p3 = por %p104_p2, %p103_p1  ;;  %p109_p4 = scmp.ne.s32.totalorder %s890_s19, %s886_s18 }
   0xe   : > { %p35_p5 = scmp.ge.s32.totalorder %s1168_s29, 2  ;;  %p110_p6 = scmp.eq.s32.totalorder %s661_s26, 0 }
   0xf   : > { %p180_p7 = scmp.eq.s32.totalorder %s661_s26, 3  ;;  %p186_p8 = scmp.eq.s32.totalorder %s662_s27, 3 }
  0x10   : > { %s1170_s29 = smov (%p35_p5, %s1168_s29), 0  ;;  %p1015_p9 = por %p110_p6, %p109_p4 }
  0x11   : > { %1153 = sst [smem:[#allocation12_spill]] %s1170_s29  ;;  %p1019_p10 = por %p180_p7, %p103_p1 }
  0x12   : > { %s93_s9 = ssub.s32 %s910_s24, %s1170_s29  ;;  %p1025_p11 = por %p186_p8, %p109_p4 }
  0x13   : > { %p94_p12 = scmp.eq.s32.totalorder %s93_s9, 0  ;;  %p705_p13 = scmp.lt.s32.totalorder %s914_s25, 4 }
  0x14   : > { %s230_s11 = sand.u32 1, %s894_s20   ;;  %s685_s14 = sshll.u32 %s910_s24, 5 }
  0x15   : > { %s1032_s12 = scalar_select %p94_p12, %s894_s20, %s96_s30  }
  0x16   : > { %s665_s13 = sshll.u32 %s230_s11, 5  ;;  %s239_s17 = scalar_lea.hbm %s1144_s2, %s685_s14 }
  0x17   : > { %s234_s26 = scalar_lea.vmem [#allocation4], %s665_s13  ;;  %s240_s28 = sshll.u32 %s239_s17, 4  ;;  %s241_s28 = int_to_ptr.hbm [resolvable:$true] %s240_s28 }
  0x18   : > { %s242_s27 = sshll.u32 %s234_s26, 4  ;;  %p698_p0 = pnand %p705_p13, %p1007_p3  ;;  %s243_s27 = int_to_ptr.vmem [resolvable:$true] %s242_s27 }
  0x19   : > { %p668_p1 = scmp.ge.s32.totalorder %s914_s25, 1  ;;  %s231_s9 = scalar_lea.sflag [#allocation5], %s230_s11 }
  0x1a   : > { %s916_s29 = smov 128   ;;  %s917_s23 = smov 8  }
  0x1b   : > { %700 = dma.hbm_to_vmem [thread:$0]  (!%p698_p0), %s241_s28, 512, %s243_s27, %s231_s9, %s916_s29, %s916_s29, %s917_s23  }
  0x1c   : > { %p257_p2 = scmp.lt.s32.totalorder %s914_s25, 5 }
  0x1e   : > { %p258_p4 = pnand %p668_p1, %p257_p2 }
  0x1f   : > { %s1043_s30 = sand.u32 (!%p258_p4), 1, %s890_s19  }
  0x20   : > { %261 = sbr.rel (%p258_p4) target bundleno = 656 (0x290), region = 40  ;;  %s669_s13 = sshll.u32 (!%p258_p4), %s1043_s30, 5 }
  0x21   : > { %s264_s14 = scalar_lea.sflag (!%p258_p4), [#allocation5], %s1043_s30  ;;  %s267_s15 = scalar_lea.vmem (!%p258_p4), [#allocation4], %s669_s13 }
  0x25   : > { %877 = dma.done.wait (%p1015_p9), %s264_s14, 512  }
  0x26   : > { %879 = vsyncadd (%p1015_p9), %s264_s14, 4294966784  ;;  %s670_s23 = sshll.u32 %s1043_s30, 1  ;;  %p316_p3 = scmp.lt.s32.totalorder %s898_s21, 1  ;;  %v352_v0 = vld [vmem:[%s267_s15 + $0x10] sm:$0xff]  ;;  %v353_v1 = vld [vmem:[%s267_s15 + $0x18] sm:$0xff]  ;;  %vm356_vm0 = vcmask 261120  }
  0x27   : > { %v350_v2 = vld [vmem:[%s267_s15] sm:$0xff]  ;;  %v355_v3 = vpack.c.bf16 %v353_v1, %v352_v0  ;;  %v351_v4 = vld [vmem:[%s267_s15 + $0x8] sm:$0xff]  ;;  %v344_v11 = vld [vmem:[%s1146_s4] sm:$0xff]  ;;  %vm390_vm1 = vcmask 122880   ;;  %s919_s6 = smov 48   ;;  %s920_s11 = smov 16  }
  0x28   : > { %s1054_s28 = scalar_select %p316_p3, %s898_s21, 1  ;;  %v346_v5 = vld [vmem:[%s1146_s4 + $0x10] sm:$0xff]  ;;  %v347_v6 = vld [vmem:[%s1146_s4 + $0x18] sm:$0xff]  ;;  %v354_v7 = vpack.c.bf16 %v351_v4, %v350_v2  ;;  %v345_v12 = vld [vmem:[%s1146_s4 + $0x8] sm:$0xff]  ;;  %vm430_vm2 = vcmask 1043456   ;;  %vm396_vm3 = vcmask 255105  }
  0x29   : > { %366 = vmatpush.bf16.msra.mxu0 %v355_v3  ;;  %v349_v9 = vpack.c.bf16 %v347_v6, %v346_v5  ;;  %v348_v13 = vpack.c.bf16 %v345_v12, %v344_v11  ;;  %s922_s7 = smov 64   ;;  %s923_s17 = smov 32   ;;  %vm401_vm4 = vcmask 387330   ;;  %vm406_vm5 = vcmask 519555  }
  0x2a   : > { %s674_s29 = sshll.u32 %s1054_s28, 3  ;;  %s924_s26 = smov 112   ;;  %vm411_vm6 = vcmask 651780   ;;  %vm416_vm7 = vcmask 784005   ;;  %vm421_vm8 = vcmask 916230   ;;  %vm426_vm9 = vcmask 1048455  }
  0x2b   : > { %s332_s16 = scalar_lea.vmem %s1145_s3, %s674_s29  ;;  %383 = vmatpush.bf16.msra.mxu1 %v349_v9  ;;  %s918_s29 = smov 80   ;;  %vm477_vm10 = vcmask 1040384  }
  0x2c   : > { %v342_v8 = vld [vmem:[%s332_s16] sm:$0xff]  ;;  %s921_s16 = smov 96   ;;  %p314_p5 = scmp.lt.s32.totalorder %s902_s22, 1 }
  0x2d   : > { %v343_v10 = vpack.c.bf16 %v342_v8, %v342_v8  ;;  %367 = vmatpush.bf16.msra.mxu0 %v354_v7  ;;  %p706_p6 = scmp.eq.s32.totalorder %s898_s21, 0  ;;  %s313_s15 = scalar_lea.vmem [#allocation7], %s670_s23 }
  0x2e   : > { %s315_s27 = scalar_select %p314_p5, %s902_s22, 1 }
  0x2f   : > { %384 = vmatpush.bf16.msra.mxu1 %v348_v13  ;;  %p679_p7 = scmp.ne.s32.totalorder %s898_s21, 1 }
  0x30   : > { %676 = vmatmul.msk.bf16.vlgmr.msra.gmra.mxu0 %vm356_vm0, %v343_v10  ;;  %s671_s9 = sshll.u32 %s315_s27, 1 }
  0x31   : > { %s1075_s13 = sadd.s32 %s671_s9, %s1054_s28 }
  0x32   : > { %s672_s14 = sshll.u32 %s1075_s13, 2 }
  0xad   : > { %v369_v14 = vpop.f32.mrf.mxu0 }
  0xae   : > { %v373_v15 = vpack.c.bf16 %v369_v14, %v369_v14 }
  0xb0   : > { %677 = vmatmul.msk.bf16.vlgmr.msra.gmra.mxu1 %vm356_vm0, %v373_v15 }
  0xb5   : > { %v371_v16 = vpop.f32.mrf.mxu0 }
 0x12d   : > { %v386_v17 = vpop.f32.mrf.mxu1 }
 0x12e   : > { %413 = vrot.lane.b32.xlu2 %v386_v17, %s918_s29  ;;  %403 = vrot.lane.b32.xlu1 %v386_v17, %s919_s6  ;;  %391 = vst.msk [vmem:[#allocation3] sm:$0x1] %vm390_vm1, %v386_v17  ;;  %s321_s6 = scalar_lea.vmem %s1142_s0, %s672_s14 }
 0x12f   : > { %393 = vrot.lane.b32.xlu0 %v386_v17, %s920_s11  ;;  %v1081_v19 = vld [vmem:[%s321_s6] sm:$0xf] }
 0x130   : > { %455 = vst [vmem:[#allocation1] sm:$0xff] %v1081_v19  ;;  %v431_v20 = vsel %vm430_vm2, %v1081_v19, -inf }
 0x131   : > { %v432_v21 = vrot.slane %v431_v20, 4 }
 0x133   : > { %v433_v22 = vmax.f32 %v431_v20, %v432_v21 }
 0x135   : > { %v388_v18 = vpop.f32.mrf.mxu1  ;;  %v434_v23 = vrot.slane %v433_v22, 2 }
 0x136   : > { %418 = vrot.lane.b32.xlu2 %v386_v17, %s921_s16  ;;  %408 = vrot.lane.b32.xlu1 %v386_v17, %s922_s7  ;;  %s328_s16 = scalar_lea.vmem %s1143_s1, %s1075_s13  ;;  %s925_s7 = smov 0.0  }
 0x137   : > { %398 = vrot.lane.b32.xlu0 %v386_v17, %s923_s17  ;;  %v435_v24 = vmax.f32 %v433_v22, %v434_v23  ;;  %v457_v29 = vld [vmem:[#allocation1 + $0x1] ss:$9 sm:$0xff]  ;;  %693 = sst [smem:[#allocation2]] (%p706_p6), %s925_s7 }
 0x138   : > { %463 = vst [vmem:[#allocation1] sm:$0xff] %v1081_v19  ;;  %v488_v47 = vld [vmem:[%s328_s16] sm:$0x1]  ;;  %694 = sst [smem:[#allocation2 + $0x1]] (%p706_p6), %s925_s7 }
 0x139   : > { %v436_v25 = vrot.slane %v435_v24, 1  ;;  %s501_s17 = sld [smem:[#allocation2]] }
 0x13b   : > { %v437_v26 = vmax.f32 %v435_v24, %v436_v25 }
 0x13d   : > { %v438_v27 = vsub.f32 %v1081_v19, %v437_v26 }
 0x13f   : > { %423 = vrot.lane.b32.xlu0 %v386_v17, %s924_s26  ;;  %v439_v28 = vmul.f32 1.442695, %v438_v27  ;;  %v465_v33 = vld [vmem:[#allocation1 + $0x2] ss:$9 sm:$0xff]  ;;  %s678_s26 = sld [smem:[#allocation2 + $0x1]] }
 0x140   : > { %471 = vst [vmem:[#allocation1] sm:$0xff] %v1081_v19 }
 0x141   : > { %782 = vpow2.f32 %v439_v28 }
 0x147   : > { %v783_v30 = vpop.eup %782  ;;  %v473_v52 = vld [vmem:[#allocation1 + $0x3] ss:$9 sm:$0xff] }
 0x148   : > { %v441_v31 = vsel %vm430_vm2, %v783_v30, 0.0 }
 0x149   : > { %v442_v32 = vrot.slane %v441_v31, 4 }
 0x14b   : > { %v443_v34 = vadd.f32 %v442_v32, %v441_v31 }
 0x14d   : > { %v444_v35 = vrot.slane %v443_v34, 2 }
 0x14f   : > { %v445_v38 = vadd.f32 %v444_v35, %v443_v34 }
 0x151   : > { %v446_v40 = vrot.slane %v445_v38, 1 }
 0x153   : > { %v447_v42 = vadd.f32 %v446_v40, %v445_v38 }
 0x155   : > { %784 = vlog2.f32 %v447_v42 }
 0x15b   : > { %v785_v46 = vpop.eup %784 }
 0x15c   : > { %v449_v48 = vmul.f32 0.6931472, %v785_v46 }
 0x15e   : > { %v450_v51 = vadd.f32 %v449_v48, %v437_v26 }
 0x188   : > { %v414_v39 = vpop.permute.xlu2 %413 }
 0x190   : > { %v419_v44 = vpop.permute.xlu2 %418 }
 0x1a0   : > { %v404_v36 = vpop.permute.xlu1 %403 }
 0x1a1   : > { %v394_v37 = vpop.permute.xlu0 %393 }
 0x1a2   : > { %397 = vst.msk [vmem:[#allocation3 - $0x1] sm:$0x2] %vm396_vm3, %v394_v37 }
 0x1a8   : > { %v409_v43 = vpop.permute.xlu1 %408 }
 0x1a9   : > { %v399_v41 = vpop.permute.xlu0 %398 }
 0x1aa   : > { %402 = vst.msk [vmem:[#allocation3 - $0x2] sm:$0x4] %vm401_vm4, %v399_v41 }
 0x1ab   : > { %407 = vst.msk [vmem:[#allocation3 - $0x3] sm:$0x8] %vm406_vm5, %v404_v36 }
 0x1ac   : > { %412 = vst.msk [vmem:[#allocation3 - $0x4] sm:$0x10] %vm411_vm6, %v409_v43 }
 0x1ad   : > { %417 = vst.msk [vmem:[#allocation3 - $0x5] sm:$0x20] %vm416_vm7, %v414_v39 }
 0x1ae   : > { %422 = vst.msk [vmem:[#allocation3 - $0x6] sm:$0x40] %vm421_vm8, %v419_v44 }
 0x1b1   : > { %v424_v45 = vpop.permute.xlu0 %423 }
 0x1b2   : > { %427 = vst.msk [vmem:[#allocation3 - $0x7] sm:$0x80] %vm426_vm9, %v424_v45 }
 0x1b9   : > { %v428_v49 = vld [vmem:[#allocation3] sm:$0x1] }
 0x1ba   : > { %v489_v50 = vsub.f32 %v488_v47, %v428_v49  ;;  %vm451_vm11 = vcmp.ge.f32.partialorder %v428_v49, 0.1  ;;  %vm452_vm12 = vcmp.le.f32.partialorder %v428_v49, 0.5  ;;  %vm460_vm13 = vcmp.ge.f32.partialorder %v428_v49, 0.5 }
 0x1bb   : > { %vm453_vm14 = vmand %vm451_vm11, %vm452_vm12  ;;  %vm461_vm15 = vcmp.le.f32.partialorder %v428_v49, 1.0  ;;  %vm468_vm0 = vcmp.ge.f32.partialorder %v428_v49, 1.0  ;;  %vm469_vm1 = vcmp.le.f32.partialorder %v428_v49, 10.0 }
 0x1bc   : > { %v490_v53 = vmul.f32 %v489_v50, %v489_v50  ;;  %v459_v54 = vsel %vm453_vm14, %v457_v29, %v1081_v19  ;;  %vm462_vm2 = vmand %vm460_vm13, %vm461_vm15 }
 0x1bd   : > { %v467_v55 = vsel %vm462_vm2, %v465_v33, %v459_v54  ;;  %vm470_vm3 = vmand %vm468_vm0, %vm469_vm1 }
 0x1be   : > { %v491_v56 = vsel %vm477_vm10, %v490_v53, 0.0  ;;  %v475_v57 = vsel %vm470_vm3, %v473_v52, %v467_v55 }
 0x1bf   : > { %492 = vadd.xlane.f32.xlu2 %v491_v56  ;;  %v476_v58 = vsub.f32 %v450_v51, %v475_v57 }
 0x1c1   : > { %v478_v59 = vsel %vm477_vm10, %v476_v58, 0.0 }
 0x1c2   : > { %479 = vadd.xlane.f32.xlu1 %v478_v59 }
 0x232   : > { %v493_v60 = vpop.xlane.xlu2 %492 }
 0x233   : > { %v494_v61 = vrot.slane %v493_v60, 4 }
 0x235   : > { %v495_v62 = vadd.f32 %v494_v61, %v493_v60  ;;  %v480_v63 = vpop.xlane.xlu1 %479 }
 0x236   : > { %v481_v0 = vrot.slane %v480_v63, 4 }
 0x237   : > { %v496_v1 = vrot.slane %v495_v62, 2 }
 0x238   : > { %v482_v2 = vadd.f32 %v481_v0, %v480_v63 }
 0x239   : > { %v497_v3 = vadd.f32 %v496_v1, %v495_v62 }
 0x23a   : > { %v483_v4 = vrot.slane %v482_v2, 2 }
 0x23b   : > { %v498_v6 = vrot.slane %v497_v3, 1 }
 0x23c   : > { %v484_v5 = vadd.f32 %v483_v4, %v482_v2 }
 0x23d   : > { %v499_v9 = vadd.f32 %v498_v6, %v497_v3 }
 0x23e   : > { %v485_v7 = vrot.slane %v484_v5, 1 }
 0x240   : > { %v486_v8 = vadd.f32 %v485_v7, %v484_v5 }
 0x242   : > { %686 = vpush %v486_v8 }
 0x243   : > { %688 = vpush %v499_v9 }
 0x273   : > { %s687_s27 = spop %686  ;;  %512 = sbr.rel (%p679_p7) target bundleno = 641 (0x281), region = 52 }
 0x274   : > { %s502_s9 = sadd.f32 %s687_s27, %s501_s17  ;;  %s689_s13 = spop %688 }
 0x275   : > { %s506_s14 = sadd.f32 %s689_s13, %s678_s26 }
 0x276   : > { %504 = sst [smem:[#allocation2]] %s502_s9 }
 0x277   : > { %508 = sst [smem:[#allocation2 + $0x1]] %s506_s14 }
 0x278   : > { %s513_s29 = sld [smem:[#allocation2]] }
 0x279   : > { %s680_s6 = sld [smem:[#allocation2 + $0x1]] }
 0x27e   : > { %v514_v10 = vstv %s513_s29 }
 0x27f   : > { %515 = vst [vmem:[%s313_s15] sm:$0x1] %v514_v10  ;;  %v517_v11 = vstv %s680_s6 }
 0x280   : > { %518 = vst [vmem:[%s313_s15 + $0x1] sm:$0x1] %v517_v11 }
 0x281 PF: > { %s682_s28 = sshll.u32 %s902_s22, 1  ;;  %s532_s17 = sshll.u32 %s313_s15, 4  ;;  %s533_s17 = int_to_ptr.vmem [resolvable:$true] %s532_s17 }
 0x282   : > { %s530_s7 = scalar_lea.hbm %s1147_s5, %s682_s28  ;;  %s520_s21 = scalar_lea.sflag [#allocation6], %s1043_s30 }
 0x283   : > { %s534_s23 = sshll.u32 %s530_s7, 4  ;;  %s836_s22 = scalar_lea.hbm %s1147_s5, 4  ;;  %s535_s23 = int_to_ptr.hbm [resolvable:$true] %s534_s23 }
 0x284   : > { %s830_s26 = sshra.s32 %s535_s23, 4  ;;  %s831_s26 = int_to_ptr.hbm [resolvable:$true] %s830_s26 }
 0x285   : > { %s832_s27 = scalar_lea.hbm %s831_s26, 2  ;;  %p837_p13 = scmp.lt.s32.totalorder %s831_s26, %s1147_s5 }
 0x286   : > { %p833_p8 = scmp.ne.s32.totalorder %s831_s26, %s832_s27  ;;  %p838_p0 = scmp.lt.s32.totalorder %s836_s22, %s832_s27 }
 0x288   : > { %p834_p9 = pnand %p833_p8, %p1019_p10  ;;  %p839_p1 = por %p838_p0, %p837_p13 }
 0x28a   : > { %p835_p12 = pneg %p834_p9 }
 0x28c   : > { %p840_p2 = pnand %p839_p1, %p835_p12 }
 0x28e   : > { %843 = shalt.err (!%p840_p2)
}
 0x28f   : > { %695 = dma.vmem_to_hbm [thread:$0]  (%p1019_p10), %s533_s17, 32, %s535_s23, %s520_s21  }
 0x290 PF: > { %p707_p4 = scmp.ge.s32.totalorder %s914_s25, 2  ;;  %s546_s30 = sand.u32 1, %s886_s18  }
 0x291   : > { %s547_s15 = scalar_lea.sflag [#allocation6], %s546_s30 }
 0x292   : > { %p702_p3 = pnand %p707_p4, %p1025_p11 }
 0x294   : > { %p703_p5 = pneg %p702_p3 }
 0x296   : > { %881 = dma.done.wait (%p703_p5), %s547_s15, 32  }
 0x297   : > { %883 = vsyncadd (%p703_p5), %s547_s15, 4294967264  ;;  %s21_s25 = sadd.s32 1, %s914_s25   ;;  %s1157_s21 = sld [smem:[#allocation10_spill]] }
 0x298   : > { %p18_p6 = scmp.ge.s32.totalorder %s21_s25, 6   ;;  %s1158_s23 = sld [smem:[#allocation11_spill]] }
 0x299   : > { %s1159_s8 = sld [smem:[#allocation12_spill]]  ;;  %s1160_s18 = smov %s890_s19 }
 0x29a   : > { %s1161_s19 = smov %s894_s20  ;;  %s1162_s20 = smov %s1032_s12 }
 0x29b   : > { %s1163_s22 = smov %s910_s24  ;;  %20 = sbr.rel (!%p18_p6) target bundleno = 7 (0x7), region = 109 }
 0x29f   : > { %s1164_s24 = smov %s1159_s8 }
 0x2a0   :  { %553 = vsyncpa [#allocation5], 1 }
 0x2a1   :  { %555 = vsyncpa [#allocation5 + $0x1], 1 }
 0x2a2   :  { %556 = vsyncpa [#allocation6], 1 }
 0x2a3   :  { %558 = vsyncpa [#allocation6 + $0x1], 1 }

</bundles_post_ra>
